<compile_context>
chip_gen: v5e
topology: v5e:2x2
jax: 0.10.0
libtpu: 0.0.40
codegen_flags: <defaults>
</compile_context>

<pallas_src>
import numpy as np

import jax
import jax.numpy as jnp
from jax import lax
from jax.experimental import pallas as pl
from jax.experimental.pallas import tpu as pltpu

# ---------------------------------------------------------------------------
# Static toy configuration (stand-in for the wrapped backbone)
# ---------------------------------------------------------------------------
B = 2                     # batch
CIN = 4                   # true input channels
CP = 8                    # input channels zero-padded to 8 -> x_flat (32, 128)
H0 = W0 = 16              # input spatial
C1, C2, C3 = 8, 16, 32    # conv stage channels
H1, W1 = 16, 16           # conv1: stride 1, pad 1
H2, W2 = 8, 8             # conv2: stride 2, pad 1
H3, W3 = 4, 4             # conv3: stride 2, pad 1
FIN = C3                  # LinearResBlock in_size*4 (= 4 * C1 = 32)
FOUT = 16                 # LinearResBlock out_size
OUT_ROWS = 8              # final output padded to (8, 128) -> unmasked store

# MXU operand dtype. f32 keeps exact PyTorch-f32 semantics at this toy scale.
# Flip to jnp.bfloat16 on v6e/v7x at real backbone sizes (operands only; f32
# accumulation via preferred_element_type; keep the f32 epilogue for v5e).
MXU_DTYPE = jnp.float32

VMEM_SPEC = pl.BlockSpec(memory_space=pltpu.MemorySpace.VMEM)


# ---------------------------------------------------------------------------
# In-kernel helpers
# ---------------------------------------------------------------------------
def _prev_rows(v, rows_per_image):
    """out[r] = v[r-1] within each image block; zero where r % rows_per_image == 0."""
    zero = jnp.zeros((1, v.shape[1]), v.dtype)
    shifted = jnp.concatenate([zero, v[:-1, :]], axis=0)
    g = lax.broadcasted_iota(jnp.int32, v.shape, 0)
    return jnp.where((g % rows_per_image) == 0, jnp.zeros_like(shifted), shifted)


def _next_rows(v, rows_per_image):
    """out[r] = v[r+1] within each image block; zero at the last row of each image."""
    zero = jnp.zeros((1, v.shape[1]), v.dtype)
    shifted = jnp.concatenate([v[1:, :], zero], axis=0)
    g = lax.broadcasted_iota(jnp.int32, v.shape, 0)
    return jnp.where((g % rows_per_image) == (rows_per_image - 1),
                     jnp.zeros_like(shifted), shifted)


def _mxu(a, b):
    """MXU matmul: operands in MXU_DTYPE, f32 accumulation."""
    return jnp.dot(a.astype(MXU_DTYPE), b.astype(MXU_DTYPE),
                   preferred_element_type=jnp.float32)


# ---------------------------------------------------------------------------
# The single fused Pallas kernel
# ---------------------------------------------------------------------------
def _fused_forward_kernel(x_ref,        # (B*H0, W0*CP)    = (32, 128)
                          wstack_ref,   # (3, 384, 128)    stacked conv weights
                          linw_ref,     # (128, 64)        pcol@[w1|ws] and w2
                          vecs_ref,     # (16, 128)        all bias / BN / LN rows
                          conv_out_ref,  # (B*H1, W1*C1)   = (32, 128)  output 1
                          out_ref,       # (8, 128)        output 2 (padded)
                          a2_ref):       # (B*H2, W2*C2)   = (16, 128)  scratch
    f32 = jnp.float32
    eps = 1e-5
    vecs = vecs_ref[...]

    # ---- conv1: 3x3, stride 1, pad 1 --------------------------------------
    # kh taps = sublane shifts with per-image boundary masks; one matmul K=384.
    x = x_ref[...]                                                # (32, 128)
    rows1 = jnp.concatenate(
        [_prev_rows(x, H0), x, _next_rows(x, H0)], axis=1)        # (32, 384)
    a1 = jnp.maximum(_mxu(rows1, wstack_ref[0]) + vecs[0:1, :], 0.0)   # (32, 128)
    # Lane-dense conv_out store; this VMEM buffer also stages conv2's
    # strided row reads (stride-2 H downsample).
    conv_out_ref[...] = a1

    # ---- conv2: 3x3, stride 2, pad 1 --------------------------------------
    even = conv_out_ref[pl.ds(0, B * H2, stride=2), :]   # rows 2r   -> kh=1 tap
    odd = conv_out_ref[pl.ds(1, B * H2, stride=2), :]    # rows 2r+1 -> kh=2 tap
    rows2 = jnp.concatenate(
        [_prev_rows(odd, H2), even, odd], axis=1)                 # (16, 384)
    a2 = jnp.maximum(_mxu(rows2, wstack_ref[1]) + vecs[1:2, :], 0.0)   # (16, 128)
    a2_ref[...] = a2                                      # stage for conv3 reads

    # ---- conv3: 3x3, stride 2, pad 1 --------------------------------------
    even3 = a2_ref[pl.ds(0, B * H3, stride=2), :]
    odd3 = a2_ref[pl.ds(1, B * H3, stride=2), :]
    rows3 = jnp.concatenate(
        [_prev_rows(odd3, H3), even3, odd3], axis=1)              # (8, 384)
    a3 = jnp.maximum(_mxu(rows3, wstack_ref[2]) + vecs[2:3, :], 0.0)   # (8, 128)

    # ---- AdaptiveAvgPool2d((1,1)) -----------------------------------------
    # Per-image sublane row-sum; the sum over w and the 1/(H3*W3) factor are
    # folded into the linear weights (pcomb) at param-build time.
    rowsum = jnp.concatenate(
        [jnp.sum(a3[b * H3:(b + 1) * H3, :], axis=0, keepdims=True)
         for b in range(B)], axis=0)                              # (B, 128)

    # ---- LinearResBlock ----------------------------------------------------
    # (Kept in f32: tiny matmuls, and batch-2 BatchNorm is eps-sensitive.)
    linw = linw_ref[...]                                          # (128, 64)
    hsc = jnp.dot(rowsum, linw[:, 0:FIN + FOUT],
                  preferred_element_type=f32) + vecs[3:4, 0:FIN + FOUT]   # (B, 48)
    h = hsc[:, 0:FIN]                 # Linear(in->in) output
    sc = hsc[:, FIN:FIN + FOUT]       # Linear shortcut output

    # BatchNorm1d (training-mode batch statistics), two-pass variance.
    mu = jnp.mean(h, axis=0, keepdims=True)
    d = h - mu
    var = jnp.mean(d * d, axis=0, keepdims=True)
    h = d * lax.rsqrt(var + eps) * vecs[4:5, 0:FIN] + vecs[5:6, 0:FIN]
    h = jnp.maximum(h, 0.0)
    h = jnp.dot(h, linw[0:FIN, FIN + FOUT:FIN + 2 * FOUT],
                preferred_element_type=f32) + vecs[6:7, 0:FOUT]   # (B, 16)

    y = h + sc
    # LayerNorm, two-pass variance.
    mu2 = jnp.mean(y, axis=-1, keepdims=True)
    d2 = y - mu2
    var2 = jnp.mean(d2 * d2, axis=-1, keepdims=True)
    y = d2 * lax.rsqrt(var2 + eps) * vecs[7:8, 0:FOUT] + vecs[8:9, 0:FOUT]

    # Pad to a full (8, 128) block -> unmasked store; wrapper slices [:B, :FOUT].
    y = jnp.concatenate([y, jnp.zeros((B, 128 - FOUT), f32)], axis=1)
    y = jnp.concatenate([y, jnp.zeros((OUT_ROWS - B, 128), f32)], axis=0)
    out_ref[...] = y


# ---------------------------------------------------------------------------
# Host-side (init-time) construction of the stacked conv weight matrices
# ---------------------------------------------------------------------------
def _conv_wstack(w, Win, Cin, Wout, Cout, stride, pad):
    """Stacked Toeplitz weight for a 3x3 conv over lane-dense (b*h, w*Cin) rows.

    Row block kh*(Win*Cin) is the kh tap; within it row (w*Cin+ci), column
    (wo*Cout+co) holds w[co, ci, kh, kw] where w == stride*wo + kw - pad, i.e.
    kw taps, W stride, W zero-padding and the channel contraction are all folded
    into the matrix.  Each conv becomes ONE (M, 3*Win*Cin) @ (3*Win*Cin, Wout*Cout)
    MXU matmul.
    """
    w = np.asarray(w)
    K = w.shape[2]
    out = np.zeros((K * Win * Cin, Wout * Cout), np.float32)
    for kh in range(K):
        base = kh * Win * Cin
        for wo in range(Wout):
            for kw in range(K):
                wc = stride * wo + kw - pad
                if 0 <= wc < Win:
                    out[base + wc * Cin: base + (wc + 1) * Cin,
                        wo * Cout:(wo + 1) * Cout] = w[:, :, kh, kw].T
    return out


# ---------------------------------------------------------------------------
# Parameter construction (deterministic, PyTorch-style uniform fan-in init)
# ---------------------------------------------------------------------------
def make_params(key):
    ks = jax.random.split(key, 12)

    def u(k, shape, bound):
        return jax.random.uniform(k, shape, jnp.float32, -bound, bound)

    raw = {}
    for name, (ci, co), kk in [("conv1", (CIN, C1), ks[0:2]),
                               ("conv2", (C1, C2), ks[2:4]),
                               ("conv3", (C2, C3), ks[4:6])]:
        bound = 1.0 / float(np.sqrt(ci * 9))
        raw[name + "_w"] = u(kk[0], (co, ci, 3, 3), bound)
        raw[name + "_b"] = u(kk[1], (co,), bound)

    bnd = 1.0 / float(np.sqrt(FIN))
    raw["lin_res"] = {
        "w1": u(ks[6], (FIN, FIN), bnd), "b1": u(ks[7], (1, FIN), bnd),
        "bn_g": jnp.ones((1, FIN), jnp.float32), "bn_b": jnp.zeros((1, FIN), jnp.float32),
        "w2": u(ks[8], (FIN, FOUT), bnd), "b2": u(ks[9], (1, FOUT), bnd),
        "ws": u(ks[10], (FIN, FOUT), bnd), "bs": u(ks[11], (1, FOUT), bnd),
        "ln_g": jnp.ones((1, FOUT), jnp.float32), "ln_b": jnp.zeros((1, FOUT), jnp.float32),
    }

    # ---- packed kernel-side buffers (built once, 4 input DMAs total) -------
    # conv1 weight channel-padded 4->8 to match the lane-padded input.
    w1p = np.zeros((C1, CP, 3, 3), np.float32)
    w1p[:, :CIN] = np.asarray(raw["conv1_w"])
    ws1 = _conv_wstack(w1p, W0, CP, W1, C1, stride=1, pad=1)                   # (384,128)
    ws2 = _conv_wstack(np.asarray(raw["conv2_w"]), W1, C1, W2, C2, 2, 1)       # (384,128)
    ws3 = _conv_wstack(np.asarray(raw["conv3_w"]), W2, C2, W3, C3, 2, 1)       # (384,128)
    wstack = jnp.asarray(np.stack([ws1, ws2, ws3], axis=0), dtype=MXU_DTYPE)

    lr = {k: np.asarray(v) for k, v in raw["lin_res"].items()}
    # Average pool folded into the Linear / shortcut weights (K becomes 128).
    pw1 = np.tile(lr["w1"], (W3, 1)) / float(H3 * W3)                          # (128, 32)
    pws = np.tile(lr["ws"], (W3, 1)) / float(H3 * W3)                          # (128, 16)
    linw = np.zeros((W3 * C3, FIN + 2 * FOUT), np.float32)                     # (128, 64)
    linw[:, :FIN] = pw1
    linw[:, FIN:FIN + FOUT] = pws
    linw[:FIN, FIN + FOUT:FIN + 2 * FOUT] = lr["w2"]

    # All small bias / BN / LN vectors packed into one lane-padded buffer.
    vecs = np.zeros((16, 128), np.float32)
    vecs[0, :] = np.tile(np.asarray(raw["conv1_b"]), W1)   # conv1 bias tiled over wo
    vecs[1, :] = np.tile(np.asarray(raw["conv2_b"]), W2)
    vecs[2, :] = np.tile(np.asarray(raw["conv3_b"]), W3)
    vecs[3, :FIN] = lr["b1"][0]
    vecs[3, FIN:FIN + FOUT] = lr["bs"][0]
    vecs[4, :FIN] = lr["bn_g"][0]
    vecs[5, :FIN] = lr["bn_b"][0]
    vecs[6, :FOUT] = lr["b2"][0]
    vecs[7, :FOUT] = lr["ln_g"][0]
    vecs[8, :FOUT] = lr["ln_b"][0]

    return {"raw": raw,
            "wstack": wstack,
            "linw": jnp.asarray(linw),
            "vecs": jnp.asarray(vecs)}


# ---------------------------------------------------------------------------
# ResnetWrapper.forward (one pallas_call)
# ---------------------------------------------------------------------------
def resnet_wrapper_forward(params, x):
    # NCHW -> NHWC -> channel-pad 4->8 -> lane-dense (B*H0, W0*CP) = (32, 128).
    xt = jnp.transpose(x, (0, 2, 3, 1))
    xt = jnp.pad(xt, ((0, 0), (0, 0), (0, 0), (0, CP - CIN)))
    x_flat = xt.reshape(B * H0, W0 * CP)

    conv_out_flat, out_pad = pl.pallas_call(
        _fused_forward_kernel,
        out_shape=(jax.ShapeDtypeStruct((B * H1, W1 * C1), jnp.float32),
                   jax.ShapeDtypeStruct((OUT_ROWS, 128), jnp.float32)),
        in_specs=[VMEM_SPEC] * 4,
        out_specs=(VMEM_SPEC, VMEM_SPEC),
        scratch_shapes=[pltpu.VMEM((B * H2, W2 * C2), jnp.float32)],
    )(x_flat, params["wstack"], params["linw"], params["vecs"])

    # Back to PyTorch NCHW for the returned conv_out only; slice the padded out.
    conv_out = conv_out_flat.reshape(B, H1, W1, C1).transpose(0, 3, 1, 2)
    out = out_pad[:B, :FOUT]
    return conv_out, out


# ---------------------------------------------------------------------------
# Pure-JAX reference (for correctness check against the fused kernel)
# ---------------------------------------------------------------------------
def reference_forward(params, x):
    raw = params["raw"]
    hp = lax.Precision.HIGHEST
    eps = 1e-5

    def conv(z, w, b, stride):
        y = lax.conv_general_dilated(
            z, w, window_strides=(stride, stride), padding=((1, 1), (1, 1)),
            dimension_numbers=("NCHW", "OIHW", "NCHW"), precision=hp)
        return jnp.maximum(y + b[None, :, None, None], 0.0)

    c1 = conv(x, raw["conv1_w"], raw["conv1_b"], 1)
    c2 = conv(c1, raw["conv2_w"], raw["conv2_b"], 2)
    c3 = conv(c2, raw["conv3_w"], raw["conv3_b"], 2)
    pooled = jnp.mean(c3, axis=(2, 3))

    lr = raw["lin_res"]
    h = jnp.dot(pooled, lr["w1"], precision=hp) + lr["b1"]
    mu = h.mean(axis=0, keepdims=True)
    var = ((h - mu) ** 2).mean(axis=0, keepdims=True)
    h = (h - mu) / jnp.sqrt(var + eps) * lr["bn_g"] + lr["bn_b"]
    h = jnp.maximum(h, 0.0)
    h = jnp.dot(h, lr["w2"], precision=hp) + lr["b2"]
    sc = jnp.dot(pooled, lr["ws"], precision=hp) + lr["bs"]
    y = h + sc
    mu2 = y.mean(axis=-1, keepdims=True)
    var2 = ((y - mu2) ** 2).mean(axis=-1, keepdims=True)
    y = (y - mu2) / jnp.sqrt(var2 + eps) * lr["ln_g"] + lr["ln_b"]
    return c1, y


if __name__ == "__main__":
    key = jax.random.PRNGKey(0)
    k_param, k_x = jax.random.split(key)

    x = jax.random.normal(k_x, (B, CIN, H0, W0), jnp.float32)   # NCHW, like PyTorch
    params = make_params(k_param)

    fwd = jax.jit(resnet_wrapper_forward)
    conv_out, out = fwd(params, x)
    jax.block_until_ready((conv_out, out))

    assert conv_out.shape == (B, C1, H1, W1)
    assert out.shape == (B, FOUT)
    assert bool(jnp.all(jnp.isfinite(conv_out))) and bool(jnp.all(jnp.isfinite(out)))

    # Numerical check of the fused kernel against a plain-JAX reference.
    ref_c1, ref_out = jax.jit(reference_forward)(params, x)
    jax.block_until_ready((ref_c1, ref_out))
    assert jnp.allclose(conv_out, ref_c1, atol=5e-3, rtol=5e-3), \
        float(jnp.max(jnp.abs(conv_out - ref_c1)))
    assert jnp.allclose(out, ref_out, atol=5e-3, rtol=5e-3), \
        float(jnp.max(jnp.abs(out - ref_out)))

    print("KERNEL_OK")
</pallas_src>

<mosaic_0001>
module attributes {stable_mosaic.version = 11 : i64} {
  func.func @_fused_forward_kernel(%arg0: memref<32x128xf32, #tpu.memory_space<vmem>>, %arg1: memref<3x384x128xf32, #tpu.memory_space<vmem>>, %arg2: memref<128x64xf32, #tpu.memory_space<vmem>>, %arg3: memref<16x128xf32, #tpu.memory_space<vmem>>, %arg4: memref<32x128xf32, #tpu.memory_space<vmem>>, %arg5: memref<8x128xf32, #tpu.memory_space<vmem>>, %arg6: memref<16x128xf32, #tpu.memory_space<vmem>>) attributes {dimension_semantics = [], scalar_prefetch = 0 : i64, scratch_operands = 1 : i64, tpu.core_type = #tpu.core_type<tc>} {
    %c0 = arith.constant 0 : index
    %c0_0 = arith.constant 0 : index
    %0 = vector.load %arg3[%c0, %c0_0] : memref<16x128xf32, #tpu.memory_space<vmem>>, vector<16x128xf32>
    %c0_1 = arith.constant 0 : index
    %c0_2 = arith.constant 0 : index
    %1 = vector.load %arg0[%c0_1, %c0_2] : memref<32x128xf32, #tpu.memory_space<vmem>>, vector<32x128xf32>
    %cst = arith.constant 0.000000e+00 : f32
    %2 = vector.broadcast %cst : f32 to vector<1x128xf32>
    %3 = vector.extract_strided_slice %1 {offsets = [0, 0], sizes = [31, 128], strides = [1, 1]} : vector<32x128xf32> to vector<31x128xf32>
    %4 = tpu.concatenate %2, %3 in 0 : vector<1x128xf32>, vector<31x128xf32> -> vector<32x128xf32>
    %5 = tpu.iota {dimensions = array<i32: 0>} : vector<32x128xi32>
    %c16_i32 = arith.constant 16 : i32
    %c0_i32 = arith.constant 0 : i32
    %6 = arith.cmpi eq, %c16_i32, %c0_i32 : i32
    %c1_i32 = arith.constant 1 : i32
    %7 = arith.select %6, %c1_i32, %c16_i32 : i32
    %8 = vector.broadcast %7 : i32 to vector<32x128xi32>
    %9 = arith.remsi %5, %8 : vector<32x128xi32>
    %c0_i32_3 = arith.constant 0 : i32
    %10 = vector.broadcast %c0_i32_3 : i32 to vector<32x128xi32>
    %11 = arith.cmpi ne, %9, %10 : vector<32x128xi32>
    %c0_i32_4 = arith.constant 0 : i32
    %12 = vector.broadcast %c0_i32_4 : i32 to vector<32x128xi32>
    %13 = arith.cmpi slt, %9, %12 : vector<32x128xi32>
    %c0_i32_5 = arith.constant 0 : i32
    %14 = arith.cmpi slt, %7, %c0_i32_5 : i32
    %15 = vector.broadcast %14 : i1 to vector<32x128xi1>
    %16 = vector.broadcast %15 : vector<32x128xi1> to vector<32x128xi1>
    %17 = arith.xori %13, %16 : vector<32x128xi1>
    %18 = arith.andi %17, %11 : vector<32x128xi1>
    %19 = vector.broadcast %7 : i32 to vector<32x128xi32>
    %20 = arith.addi %9, %19 : vector<32x128xi32>
    %21 = arith.select %18, %20, %9 : vector<32x128xi1>, vector<32x128xi32>
    %c0_i32_6 = arith.constant 0 : i32
    %22 = vector.broadcast %c0_i32_6 : i32 to vector<32x128xi32>
    %23 = arith.cmpi eq, %21, %22 : vector<32x128xi32>
    %cst_7 = arith.constant 0.000000e+00 : f32
    %24 = vector.broadcast %cst_7 : f32 to vector<32x128xf32>
    %25 = arith.select %23, %24, %4 : vector<32x128xi1>, vector<32x128xf32>
    %cst_8 = arith.constant 0.000000e+00 : f32
    %26 = vector.broadcast %cst_8 : f32 to vector<1x128xf32>
    %27 = vector.extract_strided_slice %1 {offsets = [1, 0], sizes = [31, 128], strides = [1, 1]} : vector<32x128xf32> to vector<31x128xf32>
    %28 = tpu.concatenate %27, %26 in 0 : vector<31x128xf32>, vector<1x128xf32> -> vector<32x128xf32>
    %29 = tpu.iota {dimensions = array<i32: 0>} : vector<32x128xi32>
    %c16_i32_9 = arith.constant 16 : i32
    %c0_i32_10 = arith.constant 0 : i32
    %30 = arith.cmpi eq, %c16_i32_9, %c0_i32_10 : i32
    %c1_i32_11 = arith.constant 1 : i32
    %31 = arith.select %30, %c1_i32_11, %c16_i32_9 : i32
    %32 = vector.broadcast %31 : i32 to vector<32x128xi32>
    %33 = arith.remsi %29, %32 : vector<32x128xi32>
    %c0_i32_12 = arith.constant 0 : i32
    %34 = vector.broadcast %c0_i32_12 : i32 to vector<32x128xi32>
    %35 = arith.cmpi ne, %33, %34 : vector<32x128xi32>
    %c0_i32_13 = arith.constant 0 : i32
    %36 = vector.broadcast %c0_i32_13 : i32 to vector<32x128xi32>
    %37 = arith.cmpi slt, %33, %36 : vector<32x128xi32>
    %c0_i32_14 = arith.constant 0 : i32
    %38 = arith.cmpi slt, %31, %c0_i32_14 : i32
    %39 = vector.broadcast %38 : i1 to vector<32x128xi1>
    %40 = vector.broadcast %39 : vector<32x128xi1> to vector<32x128xi1>
    %41 = arith.xori %37, %40 : vector<32x128xi1>
    %42 = arith.andi %41, %35 : vector<32x128xi1>
    %43 = vector.broadcast %31 : i32 to vector<32x128xi32>
    %44 = arith.addi %33, %43 : vector<32x128xi32>
    %45 = arith.select %42, %44, %33 : vector<32x128xi1>, vector<32x128xi32>
    %c15_i32 = arith.constant 15 : i32
    %46 = vector.broadcast %c15_i32 : i32 to vector<32x128xi32>
    %47 = arith.cmpi eq, %45, %46 : vector<32x128xi32>
    %cst_15 = arith.constant 0.000000e+00 : f32
    %48 = vector.broadcast %cst_15 : f32 to vector<32x128xf32>
    %49 = arith.select %47, %48, %28 : vector<32x128xi1>, vector<32x128xf32>
    %50 = tpu.concatenate %25, %1, %49 in 1 : vector<32x128xf32>, vector<32x128xf32>, vector<32x128xf32> -> vector<32x384xf32>
    %c0_16 = arith.constant 0 : index
    %c0_17 = arith.constant 0 : index
    %c0_18 = arith.constant 0 : index
    %51 = vector.load %arg1[%c0_16, %c0_17, %c0_18] : memref<3x384x128xf32, #tpu.memory_space<vmem>>, vector<1x384x128xf32>
    %52 = vector.shape_cast %51 : vector<1x384x128xf32> to vector<384x128xf32>
    %cst_19 = arith.constant dense<0.000000e+00> : vector<32x128xf32>
    %53 = tpu.matmul %50, %52, %cst_19 {dimension_numbers = #tpu.dot_dimension_numbers<[1], [0], [0], [1], [0, 0, 1, 1], [], []>} : vector<32x384xf32>, vector<384x128xf32>, vector<32x128xf32> -> vector<32x128xf32>
    %54 = vector.extract_strided_slice %0 {offsets = [0, 0], sizes = [1, 128], strides = [1, 1]} : vector<16x128xf32> to vector<1x128xf32>
    %55 = vector.broadcast %54 : vector<1x128xf32> to vector<32x128xf32>
    %56 = arith.addf %53, %55 : vector<32x128xf32>
    %cst_20 = arith.constant 0.000000e+00 : f32
    %57 = vector.broadcast %cst_20 : f32 to vector<32x128xf32>
    %58 = arith.maximumf %56, %57 : vector<32x128xf32>
    %c0_21 = arith.constant 0 : index
    %c0_22 = arith.constant 0 : index
    %59 = vector.load %arg4[%c0_21, %c0_22] : memref<32x128xf32, #tpu.memory_space<vmem>>, vector<32x128xf32>
    tpu.vector_store %arg4[%c0_21, %c0_22], %58 {strides = array<i32>} : memref<32x128xf32, #tpu.memory_space<vmem>>, vector<32x128xf32>,
    %c0_23 = arith.constant 0 : index
    %c0_24 = arith.constant 0 : index
    %60 = tpu.strided_load %arg4[%c0_23, %c0_24] {strides = array<i32: 2, 1>} : memref<32x128xf32, #tpu.memory_space<vmem>>, vector<16x128xf32>
    %c1 = arith.constant 1 : index
    %c0_25 = arith.constant 0 : index
    %61 = tpu.strided_load %arg4[%c1, %c0_25] {strides = array<i32: 2, 1>} : memref<32x128xf32, #tpu.memory_space<vmem>>, vector<16x128xf32>
    %cst_26 = arith.constant 0.000000e+00 : f32
    %62 = vector.broadcast %cst_26 : f32 to vector<1x128xf32>
    %63 = vector.extract_strided_slice %61 {offsets = [0, 0], sizes = [15, 128], strides = [1, 1]} : vector<16x128xf32> to vector<15x128xf32>
    %64 = tpu.concatenate %62, %63 in 0 : vector<1x128xf32>, vector<15x128xf32> -> vector<16x128xf32>
    %65 = tpu.iota {dimensions = array<i32: 0>} : vector<16x128xi32>
    %c8_i32 = arith.constant 8 : i32
    %c0_i32_27 = arith.constant 0 : i32
    %66 = arith.cmpi eq, %c8_i32, %c0_i32_27 : i32
    %c1_i32_28 = arith.constant 1 : i32
    %67 = arith.select %66, %c1_i32_28, %c8_i32 : i32
    %68 = vector.broadcast %67 : i32 to vector<16x128xi32>
    %69 = arith.remsi %65, %68 : vector<16x128xi32>
    %c0_i32_29 = arith.constant 0 : i32
    %70 = vector.broadcast %c0_i32_29 : i32 to vector<16x128xi32>
    %71 = arith.cmpi ne, %69, %70 : vector<16x128xi32>
    %c0_i32_30 = arith.constant 0 : i32
    %72 = vector.broadcast %c0_i32_30 : i32 to vector<16x128xi32>
    %73 = arith.cmpi slt, %69, %72 : vector<16x128xi32>
    %c0_i32_31 = arith.constant 0 : i32
    %74 = arith.cmpi slt, %67, %c0_i32_31 : i32
    %75 = vector.broadcast %74 : i1 to vector<16x128xi1>
    %76 = vector.broadcast %75 : vector<16x128xi1> to vector<16x128xi1>
    %77 = arith.xori %73, %76 : vector<16x128xi1>
    %78 = arith.andi %77, %71 : vector<16x128xi1>
    %79 = vector.broadcast %67 : i32 to vector<16x128xi32>
    %80 = arith.addi %69, %79 : vector<16x128xi32>
    %81 = arith.select %78, %80, %69 : vector<16x128xi1>, vector<16x128xi32>
    %c0_i32_32 = arith.constant 0 : i32
    %82 = vector.broadcast %c0_i32_32 : i32 to vector<16x128xi32>
    %83 = arith.cmpi eq, %81, %82 : vector<16x128xi32>
    %cst_33 = arith.constant 0.000000e+00 : f32
    %84 = vector.broadcast %cst_33 : f32 to vector<16x128xf32>
    %85 = arith.select %83, %84, %64 : vector<16x128xi1>, vector<16x128xf32>
    %86 = tpu.concatenate %85, %60, %61 in 1 : vector<16x128xf32>, vector<16x128xf32>, vector<16x128xf32> -> vector<16x384xf32>
    %c1_34 = arith.constant 1 : index
    %c0_35 = arith.constant 0 : index
    %c0_36 = arith.constant 0 : index
    %87 = vector.load %arg1[%c1_34, %c0_35, %c0_36] : memref<3x384x128xf32, #tpu.memory_space<vmem>>, vector<1x384x128xf32>
    %88 = vector.shape_cast %87 : vector<1x384x128xf32> to vector<384x128xf32>
    %cst_37 = arith.constant dense<0.000000e+00> : vector<16x128xf32>
    %89 = tpu.matmul %86, %88, %cst_37 {dimension_numbers = #tpu.dot_dimension_numbers<[1], [0], [0], [1], [0, 0, 1, 1], [], []>} : vector<16x384xf32>, vector<384x128xf32>, vector<16x128xf32> -> vector<16x128xf32>
    %90 = vector.extract_strided_slice %0 {offsets = [1, 0], sizes = [1, 128], strides = [1, 1]} : vector<16x128xf32> to vector<1x128xf32>
    %91 = vector.broadcast %90 : vector<1x128xf32> to vector<16x128xf32>
    %92 = arith.addf %89, %91 : vector<16x128xf32>
    %cst_38 = arith.constant 0.000000e+00 : f32
    %93 = vector.broadcast %cst_38 : f32 to vector<16x128xf32>
    %94 = arith.maximumf %92, %93 : vector<16x128xf32>
    %c0_39 = arith.constant 0 : index
    %c0_40 = arith.constant 0 : index
    %95 = vector.load %arg6[%c0_39, %c0_40] : memref<16x128xf32, #tpu.memory_space<vmem>>, vector<16x128xf32>
    tpu.vector_store %arg6[%c0_39, %c0_40], %94 {strides = array<i32>} : memref<16x128xf32, #tpu.memory_space<vmem>>, vector<16x128xf32>,
    %c0_41 = arith.constant 0 : index
    %c0_42 = arith.constant 0 : index
    %96 = tpu.strided_load %arg6[%c0_41, %c0_42] {strides = array<i32: 2, 1>} : memref<16x128xf32, #tpu.memory_space<vmem>>, vector<8x128xf32>
    %c1_43 = arith.constant 1 : index
    %c0_44 = arith.constant 0 : index
    %97 = tpu.strided_load %arg6[%c1_43, %c0_44] {strides = array<i32: 2, 1>} : memref<16x128xf32, #tpu.memory_space<vmem>>, vector<8x128xf32>
    %cst_45 = arith.constant 0.000000e+00 : f32
    %98 = vector.broadcast %cst_45 : f32 to vector<1x128xf32>
    %99 = vector.extract_strided_slice %97 {offsets = [0, 0], sizes = [7, 128], strides = [1, 1]} : vector<8x128xf32> to vector<7x128xf32>
    %100 = tpu.concatenate %98, %99 in 0 : vector<1x128xf32>, vector<7x128xf32> -> vector<8x128xf32>
    %101 = tpu.iota {dimensions = array<i32: 0>} : vector<8x128xi32>
    %c4_i32 = arith.constant 4 : i32
    %c0_i32_46 = arith.constant 0 : i32
    %102 = arith.cmpi eq, %c4_i32, %c0_i32_46 : i32
    %c1_i32_47 = arith.constant 1 : i32
    %103 = arith.select %102, %c1_i32_47, %c4_i32 : i32
    %104 = vector.broadcast %103 : i32 to vector<8x128xi32>
    %105 = arith.remsi %101, %104 : vector<8x128xi32>
    %c0_i32_48 = arith.constant 0 : i32
    %106 = vector.broadcast %c0_i32_48 : i32 to vector<8x128xi32>
    %107 = arith.cmpi ne, %105, %106 : vector<8x128xi32>
    %c0_i32_49 = arith.constant 0 : i32
    %108 = vector.broadcast %c0_i32_49 : i32 to vector<8x128xi32>
    %109 = arith.cmpi slt, %105, %108 : vector<8x128xi32>
    %c0_i32_50 = arith.constant 0 : i32
    %110 = arith.cmpi slt, %103, %c0_i32_50 : i32
    %111 = vector.broadcast %110 : i1 to vector<8x128xi1>
    %112 = vector.broadcast %111 : vector<8x128xi1> to vector<8x128xi1>
    %113 = arith.xori %109, %112 : vector<8x128xi1>
    %114 = arith.andi %113, %107 : vector<8x128xi1>
    %115 = vector.broadcast %103 : i32 to vector<8x128xi32>
    %116 = arith.addi %105, %115 : vector<8x128xi32>
    %117 = arith.select %114, %116, %105 : vector<8x128xi1>, vector<8x128xi32>
    %c0_i32_51 = arith.constant 0 : i32
    %118 = vector.broadcast %c0_i32_51 : i32 to vector<8x128xi32>
    %119 = arith.cmpi eq, %117, %118 : vector<8x128xi32>
    %cst_52 = arith.constant 0.000000e+00 : f32
    %120 = vector.broadcast %cst_52 : f32 to vector<8x128xf32>
    %121 = arith.select %119, %120, %100 : vector<8x128xi1>, vector<8x128xf32>
    %122 = tpu.concatenate %121, %96, %97 in 1 : vector<8x128xf32>, vector<8x128xf32>, vector<8x128xf32> -> vector<8x384xf32>
    %c2 = arith.constant 2 : index
    %c0_53 = arith.constant 0 : index
    %c0_54 = arith.constant 0 : index
    %123 = vector.load %arg1[%c2, %c0_53, %c0_54] : memref<3x384x128xf32, #tpu.memory_space<vmem>>, vector<1x384x128xf32>
    %124 = vector.shape_cast %123 : vector<1x384x128xf32> to vector<384x128xf32>
    %cst_55 = arith.constant dense<0.000000e+00> : vector<8x128xf32>
    %125 = tpu.matmul %122, %124, %cst_55 {dimension_numbers = #tpu.dot_dimension_numbers<[1], [0], [0], [1], [0, 0, 1, 1], [], []>} : vector<8x384xf32>, vector<384x128xf32>, vector<8x128xf32> -> vector<8x128xf32>
    %126 = vector.extract_strided_slice %0 {offsets = [2, 0], sizes = [1, 128], strides = [1, 1]} : vector<16x128xf32> to vector<1x128xf32>
    %127 = vector.broadcast %126 : vector<1x128xf32> to vector<8x128xf32>
    %128 = arith.addf %125, %127 : vector<8x128xf32>
    %cst_56 = arith.constant 0.000000e+00 : f32
    %129 = vector.broadcast %cst_56 : f32 to vector<8x128xf32>
    %130 = arith.maximumf %128, %129 : vector<8x128xf32>
    %131 = vector.extract_strided_slice %130 {offsets = [0, 0], sizes = [4, 128], strides = [1, 1]} : vector<8x128xf32> to vector<4x128xf32>
    %cst_57 = arith.constant dense<0.000000e+00> : vector<128xf32>
    %132 = vector.multi_reduction <add>, %131, %cst_57 [0] : vector<4x128xf32> to vector<128xf32>
    %133 = vector.shape_cast %132 : vector<128xf32> to vector<1x128xf32>
    %134 = vector.extract_strided_slice %130 {offsets = [4, 0], sizes = [4, 128], strides = [1, 1]} : vector<8x128xf32> to vector<4x128xf32>
    %cst_58 = arith.constant dense<0.000000e+00> : vector<128xf32>
    %135 = vector.multi_reduction <add>, %134, %cst_58 [0] : vector<4x128xf32> to vector<128xf32>
    %136 = vector.shape_cast %135 : vector<128xf32> to vector<1x128xf32>
    %137 = tpu.concatenate %133, %136 in 0 : vector<1x128xf32>, vector<1x128xf32> -> vector<2x128xf32>
    %c0_59 = arith.constant 0 : index
    %c0_60 = arith.constant 0 : index
    %138 = vector.load %arg2[%c0_59, %c0_60] : memref<128x64xf32, #tpu.memory_space<vmem>>, vector<128x64xf32>
    %139 = vector.extract_strided_slice %138 {offsets = [0, 0], sizes = [128, 48], strides = [1, 1]} : vector<128x64xf32> to vector<128x48xf32>
    %cst_61 = arith.constant dense<0.000000e+00> : vector<2x48xf32>
    %140 = tpu.matmul %137, %139, %cst_61 {dimension_numbers = #tpu.dot_dimension_numbers<[1], [0], [0], [1], [0, 0, 1, 1], [], []>} : vector<2x128xf32>, vector<128x48xf32>, vector<2x48xf32> -> vector<2x48xf32>
    %141 = vector.extract_strided_slice %0 {offsets = [3, 0], sizes = [1, 48], strides = [1, 1]} : vector<16x128xf32> to vector<1x48xf32>
    %142 = vector.broadcast %141 : vector<1x48xf32> to vector<2x48xf32>
    %143 = arith.addf %140, %142 : vector<2x48xf32>
    %144 = vector.extract_strided_slice %143 {offsets = [0, 0], sizes = [2, 32], strides = [1, 1]} : vector<2x48xf32> to vector<2x32xf32>
    %145 = vector.extract_strided_slice %143 {offsets = [0, 32], sizes = [2, 16], strides = [1, 1]} : vector<2x48xf32> to vector<2x16xf32>
    %cst_62 = arith.constant dense<0.000000e+00> : vector<32xf32>
    %146 = vector.multi_reduction <add>, %144, %cst_62 [0] : vector<2x32xf32> to vector<32xf32>
    %147 = vector.shape_cast %146 : vector<32xf32> to vector<1x32xf32>
    %cst_63 = arith.constant 2.000000e+00 : f32
    %148 = vector.broadcast %cst_63 : f32 to vector<1x32xf32>
    %149 = arith.divf %147, %148 : vector<1x32xf32>
    %150 = vector.broadcast %149 : vector<1x32xf32> to vector<2x32xf32>
    %151 = arith.subf %144, %150 : vector<2x32xf32>
    %152 = arith.mulf %151, %151 : vector<2x32xf32>
    %cst_64 = arith.constant dense<0.000000e+00> : vector<32xf32>
    %153 = vector.multi_reduction <add>, %152, %cst_64 [0] : vector<2x32xf32> to vector<32xf32>
    %154 = vector.shape_cast %153 : vector<32xf32> to vector<1x32xf32>
    %cst_65 = arith.constant 2.000000e+00 : f32
    %155 = vector.broadcast %cst_65 : f32 to vector<1x32xf32>
    %156 = arith.divf %154, %155 : vector<1x32xf32>
    %cst_66 = arith.constant 9.99999974E-6 : f32
    %157 = vector.broadcast %cst_66 : f32 to vector<1x32xf32>
    %158 = arith.addf %156, %157 : vector<1x32xf32>
    %159 = math.rsqrt %158 : vector<1x32xf32>
    %160 = vector.broadcast %159 : vector<1x32xf32> to vector<2x32xf32>
    %161 = arith.mulf %151, %160 : vector<2x32xf32>
    %162 = vector.extract_strided_slice %0 {offsets = [4, 0], sizes = [1, 32], strides = [1, 1]} : vector<16x128xf32> to vector<1x32xf32>
    %163 = vector.broadcast %162 : vector<1x32xf32> to vector<2x32xf32>
    %164 = arith.mulf %161, %163 : vector<2x32xf32>
    %165 = vector.extract_strided_slice %0 {offsets = [5, 0], sizes = [1, 32], strides = [1, 1]} : vector<16x128xf32> to vector<1x32xf32>
    %166 = vector.broadcast %165 : vector<1x32xf32> to vector<2x32xf32>
    %167 = arith.addf %164, %166 : vector<2x32xf32>
    %cst_67 = arith.constant 0.000000e+00 : f32
    %168 = vector.broadcast %cst_67 : f32 to vector<2x32xf32>
    %169 = arith.maximumf %167, %168 : vector<2x32xf32>
    %170 = vector.extract_strided_slice %138 {offsets = [0, 48], sizes = [32, 16], strides = [1, 1]} : vector<128x64xf32> to vector<32x16xf32>
    %cst_68 = arith.constant dense<0.000000e+00> : vector<2x16xf32>
    %171 = tpu.matmul %169, %170, %cst_68 {dimension_numbers = #tpu.dot_dimension_numbers<[1], [0], [0], [1], [0, 0, 1, 1], [], []>} : vector<2x32xf32>, vector<32x16xf32>, vector<2x16xf32> -> vector<2x16xf32>
    %172 = vector.extract_strided_slice %0 {offsets = [6, 0], sizes = [1, 16], strides = [1, 1]} : vector<16x128xf32> to vector<1x16xf32>
    %173 = vector.broadcast %172 : vector<1x16xf32> to vector<2x16xf32>
    %174 = arith.addf %171, %173 : vector<2x16xf32>
    %175 = arith.addf %174, %145 : vector<2x16xf32>
    %cst_69 = arith.constant dense<0.000000e+00> : vector<2xf32>
    %176 = vector.multi_reduction <add>, %175, %cst_69 [1] : vector<2x16xf32> to vector<2xf32>
    %177 = vector.shape_cast %176 : vector<2xf32> to vector<2x1xf32>
    %cst_70 = arith.constant 1.600000e+01 : f32
    %178 = vector.broadcast %cst_70 : f32 to vector<2x1xf32>
    %179 = arith.divf %177, %178 : vector<2x1xf32>
    %180 = vector.broadcast %179 : vector<2x1xf32> to vector<2x16xf32>
    %181 = arith.subf %175, %180 : vector<2x16xf32>
    %182 = arith.mulf %181, %181 : vector<2x16xf32>
    %cst_71 = arith.constant dense<0.000000e+00> : vector<2xf32>
    %183 = vector.multi_reduction <add>, %182, %cst_71 [1] : vector<2x16xf32> to vector<2xf32>
    %184 = vector.shape_cast %183 : vector<2xf32> to vector<2x1xf32>
    %cst_72 = arith.constant 1.600000e+01 : f32
    %185 = vector.broadcast %cst_72 : f32 to vector<2x1xf32>
    %186 = arith.divf %184, %185 : vector<2x1xf32>
    %cst_73 = arith.constant 9.99999974E-6 : f32
    %187 = vector.broadcast %cst_73 : f32 to vector<2x1xf32>
    %188 = arith.addf %186, %187 : vector<2x1xf32>
    %189 = math.rsqrt %188 : vector<2x1xf32>
    %190 = vector.broadcast %189 : vector<2x1xf32> to vector<2x16xf32>
    %191 = arith.mulf %181, %190 : vector<2x16xf32>
    %192 = vector.extract_strided_slice %0 {offsets = [7, 0], sizes = [1, 16], strides = [1, 1]} : vector<16x128xf32> to vector<1x16xf32>
    %193 = vector.broadcast %192 : vector<1x16xf32> to vector<2x16xf32>
    %194 = arith.mulf %191, %193 : vector<2x16xf32>
    %195 = vector.extract_strided_slice %0 {offsets = [8, 0], sizes = [1, 16], strides = [1, 1]} : vector<16x128xf32> to vector<1x16xf32>
    %196 = vector.broadcast %195 : vector<1x16xf32> to vector<2x16xf32>
    %197 = arith.addf %194, %196 : vector<2x16xf32>
    %cst_74 = arith.constant 0.000000e+00 : f32
    %198 = vector.broadcast %cst_74 : f32 to vector<2x112xf32>
    %199 = tpu.concatenate %197, %198 in 1 : vector<2x16xf32>, vector<2x112xf32> -> vector<2x128xf32>
    %cst_75 = arith.constant 0.000000e+00 : f32
    %200 = vector.broadcast %cst_75 : f32 to vector<6x128xf32>
    %201 = tpu.concatenate %199, %200 in 0 : vector<2x128xf32>, vector<6x128xf32> -> vector<8x128xf32>
    %c0_76 = arith.constant 0 : index
    %c0_77 = arith.constant 0 : index
    %202 = vector.load %arg5[%c0_76, %c0_77] : memref<8x128xf32, #tpu.memory_space<vmem>>, vector<8x128xf32>
    tpu.vector_store %arg5[%c0_76, %c0_77], %201 {strides = array<i32>} : memref<8x128xf32, #tpu.memory_space<vmem>>, vector<8x128xf32>,
    return
  }
}

</mosaic_0001>

<bundles_post_ra>
// kernel: resnet_wrapper_forward.1
= control target key start
LH: loop header
LB: loop body
LE: loop exit
PB: predicated region body
PF: predicated region fallthrough
CT: control target
= control target key end

     0   :  { %v42_v30 = vlaneseq  ;;  %vm103_vm0 = vcmask 1046528   ;;  %vm29_vm1 = vcmask 1040384   ;;  %s901_s23 = smov 80   ;;  %vm566_vm9 = vcmask 1043456   ;;  %s1503_s1 = inlined_call_operand.vmem [shape: f32[3,384,128], index: 1, kind: input, shape index: {}]   ;;  %s1504_s0 = inlined_call_operand.vmem [shape: f32[32,128], index: 0, kind: input, shape index: {}]   ;;  %s1505_s3 = inlined_call_operand.vmem [shape: f32[16,128], index: 3, kind: input, shape index: {}]   ;;  %s1506_s4 = inlined_call_operand.vmem [shape: f32[32,128], index: 4, kind: output, shape index: {0}]   ;;  %s1507_s2 = inlined_call_operand.vmem [shape: f32[128,64], index: 2, kind: input, shape index: {}]   ;;  %s1508_s5 = inlined_call_operand.vmem [shape: f32[8,128], index: 5, kind: output, shape index: {1}]  }
   0x1   :  { %v171_v0 = vld [vmem:[%s1503_s1 + $0x178] sm:$0xff]  ;;  %v170_v2 = vld [vmem:[%s1503_s1 + $0x170] sm:$0xff]  ;;  %v169_v5 = vld [vmem:[%s1503_s1 + $0x168] sm:$0xff]  ;;  %vm622_vm10 = vcmask 254976   ;;  %vm682_vm15 = vcmask 261120  }
   0x2   :  { %v139_v1 = vld [vmem:[%s1503_s1 + $0x78] sm:$0xff]  ;;  %231 = vmatpush.msra.mxu2 %v171_v0  ;;  %v138_v3 = vld [vmem:[%s1503_s1 + $0x70] sm:$0xff]  ;;  %v137_v6 = vld [vmem:[%s1503_s1 + $0x68] sm:$0xff]  ;;  %v1046_v38 = vshrl.u32 %v42_v30, 7 }
   0x3   :  { %173 = vmatpush.msra.mxu0 %v139_v1  ;;  %v155_v4 = vld [vmem:[%s1503_s1 + $0xf8] sm:$0xff]  ;;  %v154_v7 = vld [vmem:[%s1503_s1 + $0xf0] sm:$0xff]  ;;  %v153_v8 = vld [vmem:[%s1503_s1 + $0xe8] sm:$0xff] }
   0x4   :  { %202 = vmatpush.msra.mxu1 %v155_v4  ;;  %232 = vmatpush.msra.mxu2 %v170_v2  ;;  %v168_v9 = vld [vmem:[%s1503_s1 + $0x160] sm:$0xff]  ;;  %v167_v12 = vld [vmem:[%s1503_s1 + $0x158] sm:$0xff]  ;;  %v166_v15 = vld [vmem:[%s1503_s1 + $0x150] sm:$0xff]  ;;  %v51_v49 = vand.u32 15, %v1046_v38  ;;  %v1097_v59 = vadd.s32 8, %v1046_v38 }
   0x5   :  { %174 = vmatpush.msra.mxu0 %v138_v3  ;;  %v136_v10 = vld [vmem:[%s1503_s1 + $0x60] sm:$0xff]  ;;  %v135_v13 = vld [vmem:[%s1503_s1 + $0x58] sm:$0xff]  ;;  %v134_v16 = vld [vmem:[%s1503_s1 + $0x50] sm:$0xff] }
   0x6   :  { %203 = vmatpush.msra.mxu1 %v154_v7  ;;  %233 = vmatpush.msra.mxu2 %v169_v5  ;;  %v152_v11 = vld [vmem:[%s1503_s1 + $0xe0] sm:$0xff]  ;;  %v151_v14 = vld [vmem:[%s1503_s1 + $0xd8] sm:$0xff]  ;;  %v150_v17 = vld [vmem:[%s1503_s1 + $0xd0] sm:$0xff]  ;;  %vm872_vm2 = vcmp.ne.s32.totalorder %v51_v49, 0  ;;  %v58_v1 = vand.u32 15, %v1097_v59 }
   0x7   :  { %175 = vmatpush.msra.mxu0 %v137_v6  ;;  %v165_v18 = vld [vmem:[%s1503_s1 + $0x148] sm:$0xff]  ;;  %v164_v21 = vld [vmem:[%s1503_s1 + $0x140] sm:$0xff]  ;;  %v163_v24 = vld [vmem:[%s1503_s1 + $0x138] sm:$0xff] }
   0x8   :  { %204 = vmatpush.msra.mxu1 %v153_v8  ;;  %234 = vmatpush.msra.mxu2 %v168_v9  ;;  %v133_v19 = vld [vmem:[%s1503_s1 + $0x48] sm:$0xff]  ;;  %v132_v22 = vld [vmem:[%s1503_s1 + $0x40] sm:$0xff]  ;;  %v131_v25 = vld [vmem:[%s1503_s1 + $0x38] sm:$0xff]  ;;  %vm874_vm3 = vcmp.ne.s32.totalorder %v58_v1, 15  ;;  %v45_v9 = vadd.s32 16, %v1046_v38 }
   0x9   :  { %176 = vmatpush.msra.mxu0 %v136_v10  ;;  %v149_v20 = vld [vmem:[%s1503_s1 + $0xc8] sm:$0xff]  ;;  %v148_v23 = vld [vmem:[%s1503_s1 + $0xc0] sm:$0xff]  ;;  %v147_v26 = vld [vmem:[%s1503_s1 + $0xb8] sm:$0xff] }
   0xa   :  { %205 = vmatpush.msra.mxu1 %v152_v11  ;;  %235 = vmatpush.msra.mxu2 %v167_v12  ;;  %v162_v27 = vld [vmem:[%s1503_s1 + $0x130] sm:$0xff]  ;;  %v161_v31 = vld [vmem:[%s1503_s1 + $0x128] sm:$0xff]  ;;  %v160_v34 = vld [vmem:[%s1503_s1 + $0x120] sm:$0xff] }
   0xb   :  { %177 = vmatpush.msra.mxu0 %v135_v13  ;;  %v130_v28 = vld [vmem:[%s1503_s1 + $0x30] sm:$0xff]  ;;  %v129_v32 = vld [vmem:[%s1503_s1 + $0x28] sm:$0xff]  ;;  %v128_v35 = vld [vmem:[%s1503_s1 + $0x20] sm:$0xff]  ;;  %v65_v13 = vand.u32 15, %v45_v9 }
   0xc   :  { %206 = vmatpush.msra.mxu1 %v151_v14  ;;  %236 = vmatpush.msra.mxu2 %v166_v15  ;;  %v146_v29 = vld [vmem:[%s1503_s1 + $0xb0] sm:$0xff]  ;;  %v145_v33 = vld [vmem:[%s1503_s1 + $0xa8] sm:$0xff]  ;;  %v159_v36 = vld [vmem:[%s1503_s1 + $0x118] sm:$0xff] }
   0xd   :  { %178 = vmatpush.msra.mxu0 %v134_v16  ;;  %v144_v37 = vld [vmem:[%s1503_s1 + $0xa0] sm:$0xff]  ;;  %v127_v39 = vld [vmem:[%s1503_s1 + $0x18] sm:$0xff]  ;;  %v1057_v41 = vld [vmem:[%s1504_s0 + $0x8] sm:$0xff]  ;;  %vm873_vm4 = vcmp.ne.s32.totalorder %v65_v13, 0  ;;  %v46_v16 = vadd.s32 24, %v1046_v38 }
   0xe   :  { %207 = vmatpush.msra.mxu1 %v150_v17  ;;  %237 = vmatpush.msra.mxu2 %v165_v18  ;;  %v21_v40 = vld [vmem:[%s1504_s0] sm:$0xff]  ;;  %v143_v42 = vld [vmem:[%s1503_s1 + $0x98] sm:$0xff]  ;;  %v158_v43 = vld [vmem:[%s1503_s1 + $0x110] sm:$0xff]  ;;  %v105_v47 = vrot.slane %v1057_v41, 1  ;;  %v31_v3 = vrot.slane %v1057_v41, 7 }
   0xf   :  { %179 = vmatpush.msra.mxu0 %v133_v19  ;;  %v126_v44 = vld [vmem:[%s1503_s1 + $0x10] sm:$0xff]  ;;  %v104_v46 = vrot.slane %v21_v40, 1  ;;  %v30_v48 = vrot.slane %v21_v40, 7  ;;  %v157_v50 = vld [vmem:[%s1503_s1 + $0x108] sm:$0xff]  ;;  %v784_v53 = vld [vmem:[%s1503_s1 + $0x1f8] sm:$0xff]  ;;  %v72_v17 = vand.u32 15, %v46_v16 }
  0x10   :  { %208 = vmatpush.msra.mxu1 %v149_v20  ;;  %238 = vmatpush.msra.mxu2 %v164_v21  ;;  %v142_v45 = vld [vmem:[%s1503_s1 + $0x90] sm:$0xff]  ;;  %v125_v51 = vld [vmem:[%s1503_s1 + $0x8] sm:$0xff]  ;;  %v156_v54 = vld [vmem:[%s1503_s1 + $0x100] sm:$0xff] }
  0x11   :  { %180 = vmatpush.msra.mxu0 %v132_v22  ;;  %v141_v52 = vld [vmem:[%s1503_s1 + $0x88] sm:$0xff]  ;;  %v124_v55 = vld [vmem:[%s1503_s1] sm:$0xff]  ;;  %361 = vmatpush.msra.mxu3 %v784_v53  ;;  %v783_v56 = vld [vmem:[%s1503_s1 + $0x1f0] sm:$0xff]  ;;  %v106_v57 = vsel %vm103_vm0, %v104_v46, %v105_v47  ;;  %v41_v58 = vsel %vm29_vm1, 0.0, %v30_v48  ;;  %v32_v8 = vsel %vm29_vm1, %v30_v48, %v31_v3  ;;  %vm875_vm5 = vcmp.ne.s32.totalorder %v72_v17, 15 }
  0x12   :  { %209 = vmatpush.msra.mxu1 %v148_v23  ;;  %239 = vmatpush.msra.mxu2 %v163_v24  ;;  %v140_v60 = vld [vmem:[%s1503_s1 + $0x80] sm:$0xff]  ;;  %v23_v61 = vld [vmem:[%s1504_s0 + $0x10] sm:$0xff]  ;;  %v800_v62 = vld [vmem:[%s1503_s1 + $0x278] sm:$0xff] }
  0x13   :  { %181 = vmatpush.msra.mxu0 %v131_v25  ;;  %362 = vmatpush.msra.mxu3 %v783_v56  ;;  %v816_v63 = vld [vmem:[%s1503_s1 + $0x2f8] sm:$0xff]  ;;  %v799_v0 = vld [vmem:[%s1503_s1 + $0x270] sm:$0xff]  ;;  %v107_v2 = vrot.slane %v23_v61, 1  ;;  %v798_v5 = vld [vmem:[%s1503_s1 + $0x268] sm:$0xff]  ;;  %v33_v12 = vrot.slane %v23_v61, 7 }
  0x14   :  { %210 = vmatpush.msra.mxu1 %v147_v26  ;;  %240 = vmatpush.msra.mxu2 %v162_v27  ;;  %v815_v4 = vld [vmem:[%s1503_s1 + $0x2f0] sm:$0xff]  ;;  %v814_v6 = vld [vmem:[%s1503_s1 + $0x2e8] sm:$0xff]  ;;  %v24_v10 = vld [vmem:[%s1504_s0 + $0x18] sm:$0xff] }
  0x15   :  { %182 = vmatpush.msra.mxu0 %v130_v28  ;;  %v108_v7 = vsel %vm103_vm0, %v105_v47, %v107_v2  ;;  %v109_v11 = vrot.slane %v24_v10, 1  ;;  %v34_v15 = vsel %vm29_vm1, %v31_v3, %v33_v12  ;;  %v35_v18 = vrot.slane %v24_v10, 7  ;;  %v797_v21 = vld [vmem:[%s1503_s1 + $0x260] sm:$0xff]  ;;  %v782_v23 = vld [vmem:[%s1503_s1 + $0x1e8] sm:$0xff]  ;;  %v796_v24 = vld [vmem:[%s1503_s1 + $0x258] sm:$0xff] }
  0x16   :  { %211 = vmatpush.msra.mxu1 %v146_v29  ;;  %241 = vmatpush.msra.mxu2 %v161_v31  ;;  %v813_v22 = vld [vmem:[%s1503_s1 + $0x2e0] sm:$0xff]  ;;  %v812_v25 = vld [vmem:[%s1503_s1 + $0x2d8] sm:$0xff]  ;;  %v795_v27 = vld [vmem:[%s1503_s1 + $0x250] sm:$0xff] }
  0x17   :  { %183 = vmatpush.msra.mxu0 %v129_v32  ;;  %v110_v14 = vsel %vm103_vm0, %v107_v2, %v109_v11  ;;  %v115_v19 = vsel %vm103_vm0, %v109_v11, 0.0  ;;  %v36_v20 = vsel %vm29_vm1, %v33_v12, %v35_v18  ;;  %363 = vmatpush.msra.mxu3 %v782_v23  ;;  %v781_v26 = vld [vmem:[%s1503_s1 + $0x1e0] sm:$0xff]  ;;  %v811_v28 = vld [vmem:[%s1503_s1 + $0x2d0] sm:$0xff]  ;;  %v780_v29 = vld [vmem:[%s1503_s1 + $0x1d8] sm:$0xff]  ;;  %vm711_vm0 = vcmask 123904  }
  0x18   :  { %212 = vmatpush.msra.mxu1 %v145_v33  ;;  %242 = vmatpush.msra.mxu2 %v160_v34  ;;  %v794_v30 = vld [vmem:[%s1503_s1 + $0x248] sm:$0xff]  ;;  %v779_v32 = vld [vmem:[%s1503_s1 + $0x1d0] sm:$0xff]  ;;  %v793_v33 = vld [vmem:[%s1503_s1 + $0x240] sm:$0xff] }
  0x19   :  { %184 = vmatpush.msra.mxu0 %v128_v35  ;;  %364 = vmatpush.msra.mxu3 %v781_v26  ;;  %v810_v31 = vld [vmem:[%s1503_s1 + $0x2c8] sm:$0xff]  ;;  %v809_v34 = vld [vmem:[%s1503_s1 + $0x2c0] sm:$0xff]  ;;  %v788_v49 = vld [vmem:[%s1503_s1 + $0x218] sm:$0xff] }
  0x1a   :  { %213 = vmatpush.msra.mxu1 %v144_v37  ;;  %243 = vmatpush.msra.mxu2 %v159_v36  ;;  %v778_v35 = vld [vmem:[%s1503_s1 + $0x1c8] sm:$0xff]  ;;  %v792_v36 = vld [vmem:[%s1503_s1 + $0x238] sm:$0xff]  ;;  %v789_v46 = vld [vmem:[%s1503_s1 + $0x220] sm:$0xff] }
  0x1b   :  { %185 = vmatpush.msra.mxu0 %v127_v39  ;;  %365 = vmatpush.msra.mxu3 %v780_v29  ;;  %v808_v37 = vld [vmem:[%s1503_s1 + $0x2b8] sm:$0xff]  ;;  %v777_v39 = vld [vmem:[%s1503_s1 + $0x1c0] sm:$0xff]  ;;  %v774_v48 = vld [vmem:[%s1503_s1 + $0x1a8] sm:$0xff] }
  0x1c   :  { %214 = vmatpush.msra.mxu1 %v143_v42  ;;  %244 = vmatpush.msra.mxu2 %v158_v43  ;;  %v776_v42 = vld [vmem:[%s1503_s1 + $0x1b8] sm:$0xff]  ;;  %v790_v43 = vld [vmem:[%s1503_s1 + $0x228] sm:$0xff]  ;;  %v805_v47 = vld [vmem:[%s1503_s1 + $0x2a0] sm:$0xff] }
  0x1d   :  { %186 = vmatpush.msra.mxu0 %v126_v44  ;;  %366 = vmatpush.msra.mxu3 %v779_v32  ;;  %v806_v44 = vld [vmem:[%s1503_s1 + $0x2a8] sm:$0xff]  ;;  %v803_v53 = vld [vmem:[%s1503_s1 + $0x290] sm:$0xff] }
  0x1e   :  { %215 = vmatpush.msra.mxu1 %v142_v45  ;;  %245 = vmatpush.msra.mxu2 %v157_v50  ;;  %v775_v45 = vld [vmem:[%s1503_s1 + $0x1b0] sm:$0xff]  ;;  %v804_v50 = vld [vmem:[%s1503_s1 + $0x298] sm:$0xff]  ;;  %v802_v56 = vld [vmem:[%s1503_s1 + $0x288] sm:$0xff] }
  0x1f   :  { %187 = vmatpush.msra.mxu0 %v125_v51  ;;  %367 = vmatpush.msra.mxu3 %v778_v35  ;;  %v773_v51 = vld [vmem:[%s1503_s1 + $0x1a0] sm:$0xff] }
  0x20   :  { %216 = vmatpush.msra.mxu1 %v141_v52  ;;  %246 = vmatpush.msra.mxu2 %v156_v54  ;;  %v787_v52 = vld [vmem:[%s1503_s1 + $0x210] sm:$0xff]  ;;  %v772_v54 = vld [vmem:[%s1503_s1 + $0x198] sm:$0xff] }
  0x21   :  { %188 = vmatpush.msra.mxu0 %v124_v55  ;;  %247 = vmatmul.f32.vlgmr.msra.gmra.mxu2 %v106_v57  ;;  %v786_v55 = vld [vmem:[%s1503_s1 + $0x208] sm:$0xff]  ;;  %v771_v57 = vld [vmem:[%s1503_s1 + $0x190] sm:$0xff] }
  0x22   :  { %759 = vmatmul.msk.f32.vlgmr.msra.gmra.mxu0 %vm872_vm2, %v41_v58  ;;  %217 = vmatpush.msra.mxu1 %v140_v60  ;;  %v785_v58 = vld [vmem:[%s1503_s1 + $0x200] sm:$0xff] }
  0x23   :  { %384 = vmatpush.msrb.mxu0 %v800_v62  ;;  %218 = vmatmul.f32.vlgmr.msra.gmra.mxu1 %v21_v40  ;;  %v791_v40 = vld [vmem:[%s1503_s1 + $0x230] sm:$0xff]  ;;  %v801_v60 = vld [vmem:[%s1503_s1 + $0x280] sm:$0xff]  ;;  %v770_v62 = vld [vmem:[%s1503_s1 + $0x188] sm:$0xff] }
  0x24   :  { %407 = vmatpush.msrb.mxu1 %v816_v63  ;;  %368 = vmatpush.msra.mxu3 %v777_v39  ;;  %v769_v63 = vld [vmem:[%s1503_s1 + $0x180] sm:$0xff] }
  0x25   :  { %385 = vmatpush.msrb.mxu0 %v799_v0 }
  0x26   :  { %408 = vmatpush.msrb.mxu1 %v815_v4  ;;  %369 = vmatpush.msra.mxu3 %v776_v42  ;;  %v867_v42 = vld [vmem:[%s1503_s1 + $0x470] sm:$0xff] }
  0x27   :  { %386 = vmatpush.msrb.mxu0 %v798_v5 }
  0x28   :  { %409 = vmatpush.msrb.mxu1 %v814_v6  ;;  %370 = vmatpush.msra.mxu3 %v775_v45  ;;  %v866_v45 = vld [vmem:[%s1503_s1 + $0x468] sm:$0xff] }
  0x29   :  { %763 = vmatmul.msk.f32.gmra.mxu2 %vm874_vm3, %v108_v7  ;;  %387 = vmatpush.msrb.mxu0 %v797_v21  ;;  %v287_v21 = vand.u32 7, %v1046_v38 }
  0x2a   :  { %192 = vmatmul.f32.gmra.mxu0 %v32_v8  ;;  %410 = vmatpush.msrb.mxu1 %v813_v22 }
  0x2b   :  { %221 = vmatmul.f32.gmra.mxu1 %v1057_v41  ;;  %388 = vmatpush.msrb.mxu0 %v796_v24  ;;  %v807_v41 = vld [vmem:[%s1503_s1 + $0x2b0] sm:$0xff]  ;;  %vm876_vm6 = vcmp.ne.s32.totalorder %v287_v21, 0 }
  0x2c   :  { %411 = vmatpush.msrb.mxu1 %v812_v25  ;;  %371 = vmatpush.msra.mxu3 %v774_v48  ;;  %v865_v48 = vld [vmem:[%s1503_s1 + $0x460] sm:$0xff] }
  0x2d   :  { %389 = vmatpush.msrb.mxu0 %v795_v27 }
  0x2e   :  { %412 = vmatpush.msrb.mxu1 %v811_v28  ;;  %372 = vmatpush.msra.mxu3 %v773_v51  ;;  %v848_v51 = vld [vmem:[%s1503_s1 + $0x3d8] sm:$0xff] }
  0x2f   :  { %390 = vmatpush.msrb.mxu0 %v794_v30 }
  0x30   :  { %413 = vmatpush.msrb.mxu1 %v810_v31  ;;  %373 = vmatpush.msra.mxu3 %v772_v54  ;;  %v847_v54 = vld [vmem:[%s1503_s1 + $0x3d0] sm:$0xff] }
  0x31   :  { %253 = vmatmul.f32.gmra.mxu2 %v110_v14  ;;  %391 = vmatpush.msrb.mxu0 %v793_v33 }
  0x32   :  { %761 = vmatmul.msk.f32.gmra.mxu0 %vm873_vm4, %v34_v15  ;;  %414 = vmatpush.msrb.mxu1 %v809_v34  ;;  %v294_v34 = vand.u32 7, %v1097_v59  ;;  %v868_v59 = vld [vmem:[%s1503_s1 + $0x478] sm:$0xff] }
  0x33   :  { %224 = vmatmul.f32.gmra.mxu1 %v23_v61  ;;  %392 = vmatpush.msrb.mxu0 %v792_v36  ;;  %v1254_v61 = vld [vmem:[%s1505_s3] sm:$0xff] }
  0x34   :  { %415 = vmatpush.msrb.mxu1 %v808_v37  ;;  %374 = vmatpush.msra.mxu3 %v771_v57  ;;  %v172_v0 = vperm.slane %v1254_v61, 0  ;;  %vm877_vm7 = vcmp.ne.s32.totalorder %v294_v34, 0  ;;  %v862_v57 = vld [vmem:[%s1503_s1 + $0x448] sm:$0xff]  ;;  %v360_v21 = vperm.slane %v1254_v61, 1 }
  0x35   :  { %393 = vmatpush.msrb.mxu0 %v791_v40  ;;  %v852_v40 = vld [vmem:[%s1503_s1 + $0x3f8] sm:$0xff] }
  0x36   :  { %416 = vmatpush.msrb.mxu1 %v807_v41  ;;  %375 = vmatpush.msra.mxu3 %v770_v62  ;;  %v851_v41 = vld [vmem:[%s1503_s1 + $0x3f0] sm:$0xff]  ;;  %v861_v62 = vld [vmem:[%s1503_s1 + $0x440] sm:$0xff] }
  0x37   :  { %394 = vmatpush.msrb.mxu0 %v790_v43  ;;  %v836_v43 = vld [vmem:[%s1503_s1 + $0x378] sm:$0xff] }
  0x38   :  { %417 = vmatpush.msrb.mxu1 %v806_v44  ;;  %376 = vmatpush.msra.mxu3 %v769_v63  ;;  %v850_v44 = vld [vmem:[%s1503_s1 + $0x3e8] sm:$0xff] }
  0x39   :  { %765 = vmatmul.msk.f32.gmra.mxu2 %vm875_vm5, %v115_v19  ;;  %395 = vmatpush.msrb.mxu0 %v789_v46  ;;  %v835_v46 = vld [vmem:[%s1503_s1 + $0x370] sm:$0xff]  ;;  %v830_v63 = vld [vmem:[%s1503_s1 + $0x348] sm:$0xff]  ;;  %vm745_vm5 = vcmask 130048  }
  0x3a   :  { %198 = vmatmul.f32.gmra.mxu0 %v36_v20  ;;  %418 = vmatpush.msrb.mxu1 %v805_v47  ;;  %v849_v47 = vld [vmem:[%s1503_s1 + $0x3e0] sm:$0xff] }
  0x3b   :  { %227 = vmatmul.f32.gmra.mxu1 %v24_v10  ;;  %396 = vmatpush.msrb.mxu0 %v788_v49  ;;  %v834_v49 = vld [vmem:[%s1503_s1 + $0x368] sm:$0xff] }
  0x3c   :  { %419 = vmatpush.msrb.mxu1 %v804_v50  ;;  %525 = vmatpush.msrb.mxu3 %v852_v40  ;;  %v833_v50 = vld [vmem:[%s1503_s1 + $0x360] sm:$0xff] }
  0x3d   :  { %397 = vmatpush.msrb.mxu0 %v787_v52  ;;  %505 = vmatpush.msrb.mxu2 %v836_v43  ;;  %v864_v52 = vld [vmem:[%s1503_s1 + $0x458] sm:$0xff] }
  0x3e   :  { %420 = vmatpush.msrb.mxu1 %v803_v53  ;;  %526 = vmatpush.msrb.mxu3 %v851_v41  ;;  %v832_v53 = vld [vmem:[%s1503_s1 + $0x358] sm:$0xff] }
  0x3f   :  { %398 = vmatpush.msrb.mxu0 %v786_v55  ;;  %506 = vmatpush.msrb.mxu2 %v835_v46  ;;  %v863_v55 = vld [vmem:[%s1503_s1 + $0x450] sm:$0xff] }
  0x40   :  { %421 = vmatpush.msrb.mxu1 %v802_v56  ;;  %527 = vmatpush.msrb.mxu3 %v850_v44  ;;  %v846_v56 = vld [vmem:[%s1503_s1 + $0x3c8] sm:$0xff]  ;;  %v599_v46 = vld [vmem:[%s1507_s2 + $0x70] sm:$0xff] }
  0x41   :  { %399 = vmatpush.msrb.mxu0 %v785_v58  ;;  %507 = vmatpush.msrb.mxu2 %v834_v49  ;;  %v831_v58 = vld [vmem:[%s1503_s1 + $0x350] sm:$0xff] }
  0x42   :  { %422 = vmatpush.msrb.mxu1 %v801_v60  ;;  %528 = vmatpush.msrb.mxu3 %v849_v47  ;;  %v845_v60 = vld [vmem:[%s1503_s1 + $0x3c0] sm:$0xff]  ;;  %v595_v49 = vld [vmem:[%s1507_s2 + $0x50] sm:$0xff] }
  0x43   :  { %545 = vmatpush.msra.mxu0 %v868_v59  ;;  %508 = vmatpush.msrb.mxu2 %v833_v50  ;;  %v445_v59 = vand.u32 3, %v1046_v38  ;;  %v598_v38 = vld [vmem:[%s1507_s2 + $0x68] sm:$0xff]  ;;  %v597_v47 = vld [vmem:[%s1507_s2 + $0x60] sm:$0xff] }
  0x44   :  { %529 = vmatpush.msrb.mxu3 %v848_v51  ;;  %v594_v50 = vld [vmem:[%s1507_s2 + $0x48] sm:$0xff]  ;;  %v593_v51 = vld [vmem:[%s1507_s2 + $0x40] sm:$0xff] }
  0x45   :  { %546 = vmatpush.msra.mxu0 %v867_v42  ;;  %509 = vmatpush.msrb.mxu2 %v832_v53  ;;  %vm878_vm8 = vcmp.ne.s32.totalorder %v445_v59, 0  ;;  %v591_v53 = vld [vmem:[%s1507_s2 + $0x30] sm:$0xff] }
  0x46   :  { %530 = vmatpush.msrb.mxu3 %v847_v54  ;;  %v590_v54 = vld [vmem:[%s1507_s2 + $0x28] sm:$0xff] }
  0x47   :  { %547 = vmatpush.msra.mxu0 %v866_v45  ;;  %510 = vmatpush.msrb.mxu2 %v831_v58  ;;  %v600_v45 = vld [vmem:[%s1507_s2 + $0x78] sm:$0xff]  ;;  %v586_v58 = vld [vmem:[%s1507_s2 + $0x8] sm:$0xff] }
  0x48   :  { %531 = vmatpush.msrb.mxu3 %v846_v56  ;;  %602 = vmatpush.msra.mxu1 %v600_v45  ;;  %v588_v56 = vld [vmem:[%s1507_s2 + $0x18] sm:$0xff] }
  0x49   :  { %548 = vmatpush.msra.mxu0 %v865_v48  ;;  %511 = vmatpush.msrb.mxu2 %v830_v63  ;;  %v596_v48 = vld [vmem:[%s1507_s2 + $0x58] sm:$0xff]  ;;  %v504_v63 = vperm.slane %v1254_v61, 2 }
  0x4a   :  { %532 = vmatpush.msrb.mxu3 %v845_v60  ;;  %603 = vmatpush.msra.mxu1 %v599_v46  ;;  %v585_v60 = vld [vmem:[%s1507_s2] sm:$0xff] }
  0x4b   :  { %549 = vmatpush.msra.mxu0 %v864_v52  ;;  %v592_v52 = vld [vmem:[%s1507_s2 + $0x38] sm:$0xff] }
  0x4c   :  { %604 = vmatpush.msra.mxu1 %v598_v38 }
  0x4d   :  { %550 = vmatpush.msra.mxu0 %v863_v55  ;;  %v589_v55 = vld [vmem:[%s1507_s2 + $0x20] sm:$0xff] }
  0x4e   :  { %605 = vmatpush.msra.mxu1 %v597_v47 }
  0x4f   :  { %551 = vmatpush.msra.mxu0 %v862_v57  ;;  %v587_v57 = vld [vmem:[%s1507_s2 + $0x10] sm:$0xff]  ;;  %s903_s2 = smov 96  }
  0x50   :  { %606 = vmatpush.msra.mxu1 %v596_v48 }
  0x51   :  { %552 = vmatpush.msra.mxu0 %v861_v62  ;;  %v883_v62 = vpack.i.bf16 %v587_v57, %v588_v56 }
  0x52   :  { %607 = vmatpush.msra.mxu1 %v595_v49 }
  0x53   :  { %884 = vrot.lane.b32.xlu0 %v883_v62, %s901_s23 }
  0x54   :  { %608 = vmatpush.msra.mxu1 %v594_v50 }
  0x56   :  { %609 = vmatpush.msra.mxu1 %v593_v51 }
  0x58   :  { %610 = vmatpush.msra.mxu1 %v592_v52 }
  0x5a   :  { %611 = vmatpush.msra.mxu1 %v591_v53 }
  0x5c   :  { %612 = vmatpush.msra.mxu1 %v590_v54 }
  0x5e   :  { %613 = vmatpush.msra.mxu1 %v589_v55 }
  0x60   :  { %614 = vmatpush.msra.mxu1 %v588_v56 }
  0x62   :  { %615 = vmatpush.msra.mxu1 %v587_v57 }
  0x64   :  { %616 = vmatpush.msra.mxu1 %v586_v58 }
  0x66   :  { %617 = vmatpush.msra.mxu1 %v585_v60 }
  0x9f   :  { %v190_v1 = vpop.f32.mrf.mxu0 }
  0xa0   :  { %v191_v2 = vadd.f32 %v190_v1, %v172_v0  ;;  %v219_v3 = vpop.f32.mrf.mxu1  ;;  %v860_v1 = vld [vmem:[%s1503_s1 + $0x438] sm:$0xff] }
  0xa1   :  { %553 = vmatpush.msra.mxu0 %v860_v1 }
  0xa2   :  { %v220_v4 = vadd.f32 %v219_v3, %v191_v2  ;;  %v829_v2 = vld [vmem:[%s1503_s1 + $0x340] sm:$0xff]  ;;  %v843_v3 = vld [vmem:[%s1503_s1 + $0x3b0] sm:$0xff] }
  0xa3   :  { %512 = vmatpush.msrb.mxu2 %v829_v2 }
  0xa4   :  { %v248_v5 = vpop.f32.mrf.mxu2 }
  0xa5   :  { %v249_v6 = vadd.f32 %v248_v5, %v220_v4  ;;  %v859_v4 = vld [vmem:[%s1503_s1 + $0x430] sm:$0xff]  ;;  %v828_v5 = vld [vmem:[%s1503_s1 + $0x338] sm:$0xff] }
  0xa6   :  { %554 = vmatpush.msra.mxu0 %v859_v4  ;;  %513 = vmatpush.msrb.mxu2 %v828_v5 }
  0xa7   :  { %v193_v7 = vpop.f32.mrf.mxu0  ;;  %v260_v8 = vmax.f32 %v249_v6, 0.0  ;;  %v842_v6 = vld [vmem:[%s1503_s1 + $0x3a8] sm:$0xff] }
  0xa8   :  { %v194_v9 = vadd.f32 %v193_v7, %v172_v0  ;;  %v222_v10 = vpop.f32.mrf.mxu1  ;;  %v858_v7 = vld [vmem:[%s1503_s1 + $0x428] sm:$0xff] }
  0xa9   :  { %264 = vst [vmem:[%s1506_s4] sm:$0xff] %v260_v8  ;;  %v827_v8 = vld [vmem:[%s1503_s1 + $0x330] sm:$0xff]  ;;  %555 = vmatpush.msra.mxu0 %v858_v7 }
  0xaa   :  { %v223_v11 = vadd.f32 %v222_v10, %v194_v9  ;;  %514 = vmatpush.msrb.mxu2 %v827_v8  ;;  %v841_v9 = vld [vmem:[%s1503_s1 + $0x3a0] sm:$0xff] }
  0xab   :  { %v857_v10 = vld [vmem:[%s1503_s1 + $0x420] sm:$0xff] }
  0xac   :  { %v251_v12 = vpop.f32.mrf.mxu2  ;;  %556 = vmatpush.msra.mxu0 %v857_v10 }
  0xad   :  { %v252_v13 = vadd.f32 %v251_v12, %v223_v11  ;;  %v826_v11 = vld [vmem:[%s1503_s1 + $0x328] sm:$0xff]  ;;  %v825_v12 = vld [vmem:[%s1503_s1 + $0x320] sm:$0xff] }
  0xae   :  { %515 = vmatpush.msrb.mxu2 %v826_v11 }
  0xaf   :  { %v196_v14 = vpop.f32.mrf.mxu0  ;;  %v261_v15 = vmax.f32 %v252_v13, 0.0  ;;  %v840_v13 = vld [vmem:[%s1503_s1 + $0x398] sm:$0xff] }
  0xb0   :  { %v197_v16 = vadd.f32 %v196_v14, %v172_v0  ;;  %v225_v17 = vpop.f32.mrf.mxu1  ;;  %v856_v14 = vld [vmem:[%s1503_s1 + $0x418] sm:$0xff]  ;;  %516 = vmatpush.msrb.mxu2 %v825_v12 }
  0xb1   :  { %265 = vst [vmem:[%s1506_s4 + $0x8] sm:$0xff] %v261_v15  ;;  %557 = vmatpush.msra.mxu0 %v856_v14  ;;  %v824_v15 = vld [vmem:[%s1503_s1 + $0x318] sm:$0xff] }
  0xb2   :  { %v226_v18 = vadd.f32 %v225_v17, %v197_v16  ;;  %v839_v16 = vld [vmem:[%s1503_s1 + $0x390] sm:$0xff]  ;;  %517 = vmatpush.msrb.mxu2 %v824_v15 }
  0xb3   :  { %v855_v17 = vld [vmem:[%s1503_s1 + $0x410] sm:$0xff] }
  0xb4   :  { %v254_v19 = vpop.f32.mrf.mxu2  ;;  %558 = vmatpush.msra.mxu0 %v855_v17 }
  0xb5   :  { %v255_v20 = vadd.f32 %v254_v19, %v226_v18  ;;  %v838_v18 = vld [vmem:[%s1503_s1 + $0x388] sm:$0xff] }
  0xb6   :  { %v854_v19 = vld [vmem:[%s1503_s1 + $0x408] sm:$0xff] }
  0xb7   :  { %v199_v22 = vpop.f32.mrf.mxu0  ;;  %v262_v23 = vmax.f32 %v255_v20, 0.0  ;;  %v823_v20 = vld [vmem:[%s1503_s1 + $0x310] sm:$0xff]  ;;  %559 = vmatpush.msra.mxu0 %v854_v19 }
  0xb8   :  { %v200_v24 = vadd.f32 %v199_v22, %v172_v0  ;;  %v268_v25 = vld [vmem:[%s1506_s4] ss:$2 sm:$0xff]  ;;  %v767_v26 = vld [vmem:[%s1506_s4 + $0x1] ss:$2 sm:$0xff]  ;;  %v228_v27 = vpop.f32.mrf.mxu1  ;;  %v844_v0 = vld [vmem:[%s1503_s1 + $0x3b8] sm:$0xff]  ;;  %518 = vmatpush.msrb.mxu2 %v823_v20 }
  0xb9   :  { %266 = vst [vmem:[%s1506_s4 + $0x10] sm:$0xff] %v262_v23  ;;  %400 = vmatmul.f32.vlgmr.msrb.gmra.mxu0 %v268_v25  ;;  %v277_v28 = vrot.slane %v767_v26, 7  ;;  %423 = vmatmul.f32.vlgmr.msrb.gmra.mxu1 %v767_v26  ;;  %v837_v22 = vld [vmem:[%s1503_s1 + $0x380] sm:$0xff] }
  0xba   :  { %v229_v29 = vadd.f32 %v228_v27, %v200_v24  ;;  %533 = vmatpush.msrb.mxu3 %v844_v0  ;;  %v853_v23 = vld [vmem:[%s1503_s1 + $0x400] sm:$0xff]  ;;  %v822_v24 = vld [vmem:[%s1503_s1 + $0x308] sm:$0xff]  ;;  %v888_v0 = vpack.i.bf16 %v585_v60, %v586_v58 }
  0xbb   :  { %v282_v30 = vsel %vm29_vm1, 0.0, %v277_v28  ;;  %560 = vmatpush.msra.mxu0 %v853_v23  ;;  %519 = vmatpush.msrb.mxu2 %v822_v24  ;;  %v821_v27 = vld [vmem:[%s1503_s1 + $0x300] sm:$0xff]  ;;  %v902_v24 = vmov 2.0  }
  0xbc   :  { %v257_v31 = vpop.f32.mrf.mxu2  ;;  %818 = vmatmul.msk.f32.vlgmr.msra.gmra.mxu3 %vm876_vm6, %v282_v30  ;;  %889 = vrot.lane.b32.xlu0 %v888_v0, %s901_s23  ;;  %893 = vrcp.f32 %v902_v24  ;;  %vm747_vm6 = vcmask 1041408  }
  0xbd   :  { %v258_v32 = vadd.f32 %v257_v31, %v229_v29  ;;  %534 = vmatpush.msrb.mxu3 %v843_v3  ;;  %520 = vmatpush.msrb.mxu2 %v821_v27 }
  0xbf   :  { %v263_v33 = vmax.f32 %v258_v32, 0.0  ;;  %535 = vmatpush.msrb.mxu3 %v842_v6 }
  0xc1   :  { %267 = vst [vmem:[%s1506_s4 + $0x18] sm:$0xff] %v263_v33  ;;  %536 = vmatpush.msrb.mxu3 %v841_v9 }
  0xc3   :  { %537 = vmatpush.msrb.mxu3 %v840_v13 }
  0xc5   :  { %538 = vmatpush.msrb.mxu3 %v839_v16 }
  0xc7   :  { %539 = vmatpush.msrb.mxu3 %v838_v18 }
  0xc8   :  { %v766_v35 = vld [vmem:[%s1506_s4 + $0x10] ss:$2 sm:$0xff]  ;;  %v768_v36 = vld [vmem:[%s1506_s4 + $0x11] ss:$2 sm:$0xff] }
  0xc9   :  { %403 = vmatmul.f32.gmra.mxu0 %v766_v35  ;;  %v278_v37 = vrot.slane %v768_v36, 7  ;;  %426 = vmatmul.f32.gmra.mxu1 %v768_v36 }
  0xca   :  { %540 = vmatpush.msrb.mxu3 %v837_v22 }
  0xcb   :  { %v279_v39 = vsel %vm29_vm1, %v277_v28, %v278_v37 }
  0xcc   :  { %820 = vmatmul.msk.f32.gmra.mxu3 %vm877_vm7, %v279_v39 }
 0x136   :  { %v401_v28 = vpop.f32.mrf.mxu0  ;;  %v424_v30 = vpop.f32.mrf.mxu1 }
 0x13f   :  { %v378_v25 = vpop.f32.mrf.mxu3 }
 0x140   :  { %v379_v26 = vadd.f32 %v378_v25, %v360_v21  ;;  %v894_v25 = vpop.eup %893 }
 0x141   :  { %v631_v27 = vmul.f32 2.0, %v894_v25  ;;  %vm635_vm11 = vweird.f32 %v894_v25 }
 0x142   :  { %v402_v29 = vadd.f32 %v401_v28, %v379_v26  ;;  %v601_v26 = vperm.slane %v1254_v61, 3 }
 0x144   :  { %v425_v31 = vadd.f32 %v424_v30, %v402_v29  ;;  %v632_v30 = vsub.f32 1.0, %v631_v27 }
 0x146   :  { %v430_v32 = vmax.f32 %v425_v31, 0.0  ;;  %v404_v35 = vpop.f32.mrf.mxu0  ;;  %v427_v37 = vpop.f32.mrf.mxu1 }
 0x148   :  { %432 = vst [vmem:[#allocation2] sm:$0xff] %v430_v32 }
 0x14f   :  { %v381_v33 = vpop.f32.mrf.mxu3 }
 0x150   :  { %v382_v34 = vadd.f32 %v381_v33, %v360_v21  ;;  %v633_v33 = vmul.f32 %v894_v25, %v632_v30 }
 0x152   :  { %v405_v36 = vadd.f32 %v404_v35, %v382_v34 }
 0x154   :  { %v428_v39 = vadd.f32 %v427_v37, %v405_v36  ;;  %v634_v36 = vadd.f32 %v894_v25, %v633_v33 }
 0x156   :  { %v431_v40 = vmax.f32 %v428_v39, 0.0 }
 0x158   :  { %433 = vst [vmem:[#allocation2 + $0x8] sm:$0xff] %v431_v40  ;;  %v636_v40 = vsel %vm635_vm11, %v894_v25, %v634_v36 }
 0x15f   :  { %v434_v41 = vld [vmem:[#allocation2] ss:$2 sm:$0xff]  ;;  %v436_v42 = vld [vmem:[#allocation2 + $0x1] ss:$2 sm:$0xff] }
 0x160   :  { %541 = vmatmul.f32.vlgmr.msrb.gmra.mxu3 %v434_v41  ;;  %v438_v43 = vrot.slane %v436_v42, 7  ;;  %561 = vmatmul.f32.vlgmr.msra.gmra.mxu0 %v436_v42  ;;  %v885_v42 = vpop.permute.xlu0 %884 }
 0x161   :  { %v887_v46 = vunpack.i.h.bf16 %v885_v42 }
 0x162   :  { %v440_v44 = vsel %vm29_vm1, 0.0, %v438_v43 }
 0x163   :  { %870 = vmatmul.msk.f32.vlgmr.msrb.gmra.mxu2 %vm878_vm8, %v440_v44  ;;  %v886_v44 = vunpack.i.l.bf16 %v885_v42 }
 0x165   :  { %698 = vmatpush.msra.mxu2 %v886_v44 }
 0x167   :  { %699 = vmatpush.msra.mxu2 %v887_v46 }
 0x168   :  { %v890_v49 = vpop.permute.xlu0 %889 }
 0x169   :  { %v891_v50 = vunpack.i.l.bf16 %v890_v49  ;;  %v892_v52 = vunpack.i.h.bf16 %v890_v49 }
 0x16b   :  { %700 = vmatpush.msra.mxu2 %v891_v50 }
 0x16d   :  { %701 = vmatpush.msra.mxu2 %v892_v52 }
 0x1dd   :  { %v562_v5 = vpop.f32.mrf.mxu0 }
 0x1e3   :  { %v542_v3 = vpop.f32.mrf.mxu3 }
 0x1e6   :  { %v522_v1 = vpop.f32.mrf.mxu2 }
 0x1e7   :  { %v523_v2 = vadd.f32 %v522_v1, %v504_v63 }
 0x1e9   :  { %v543_v4 = vadd.f32 %v542_v3, %v523_v2  ;;  %v660_v2 = vperm.slane %v1254_v61, 4 }
 0x1eb   :  { %v563_v6 = vadd.f32 %v562_v5, %v543_v4  ;;  %v662_v5 = vperm.slane %v1254_v61, 5 }
 0x1ed   :  { %v565_v7 = vmax.f32 %v563_v6, 0.0 }
 0x1ef   :  { %v567_v8 = vsel %vm566_vm9, %v565_v7, 0.0  ;;  %v575_v9 = vrot.slane %v565_v7, 4 }
 0x1f0   :  { %v568_v10 = vrot.slane %v567_v8, 4 }
 0x1f1   :  { %v577_v11 = vsel %vm566_vm9, %v575_v9, 0.0  ;;  %v665_v9 = vperm.slane %v1254_v61, 6 }
 0x1f2   :  { %v569_v12 = vadd.f32 %v568_v10, %v567_v8  ;;  %v578_v13 = vrot.slane %v577_v11, 4 }
 0x1f4   :  { %v570_v14 = vrot.slane %v569_v12, 2  ;;  %v579_v15 = vadd.f32 %v578_v13, %v577_v11 }
 0x1f6   :  { %v571_v16 = vadd.f32 %v570_v14, %v569_v12  ;;  %v580_v17 = vrot.slane %v579_v15, 2 }
 0x1f8   :  { %v572_v18 = vrot.slane %v571_v16, 1  ;;  %v581_v19 = vadd.f32 %v580_v17, %v579_v15  ;;  %v904_v15 = vmov 16.0  }
 0x1fa   :  { %v582_v20 = vrot.slane %v581_v19, 1  ;;  %v573_v21 = vadd.f32 %v572_v18, %v571_v16 }
 0x1fc   :  { %v583_v22 = vadd.f32 %v582_v20, %v581_v19 }
 0x1fe   :  { %v584_v23 = vsel %vm29_vm1, %v573_v21, %v583_v22 }
 0x1ff   :  { %618 = vmatmul.f32.vlgmr.msra.gmra.mxu1 %v584_v23 }
 0x27c   :  { %v619_v28 = vpop.f32.mrf.mxu1 }
 0x27d   :  { %v620_v29 = vadd.f32 %v619_v28, %v601_v26 }
 0x27f   :  { %v623_v31 = vsel %vm622_vm10, %v620_v29, 0.0  ;;  %707 = vrot.lane.b32.xlu1 %v620_v29, %s903_s2 }
 0x280   :  { %v624_v32 = vrot.slane %v623_v31, 4 }
 0x282   :  { %v625_v34 = vadd.f32 %v624_v32, %v623_v31 }
 0x284   :  { %v626_v35 = vrot.slane %v625_v34, 2 }
 0x286   :  { %v627_v37 = vadd.f32 %v626_v35, %v625_v34  ;;  %v20_v35 = vld [vmem:[%s1505_s3 + $0x8] sm:$0xff] }
 0x288   :  { %v628_v39 = vrot.slane %v627_v37, 1 }
 0x28a   :  { %v629_v59 = vadd.f32 %v628_v39, %v627_v37  ;;  %v741_v37 = vperm.slane %v1254_v61, 7 }
 0x28c   :  { %v637_v41 = vmul.f32 %v636_v40, %v629_v59 }
 0x28e   :  { %v638_v43 = vsub.f32 %v620_v29, %v637_v41 }
 0x290   :  { %v639_v45 = vmul.f32 %v638_v43, %v638_v43 }
 0x292   :  { %v640_v38 = vsel %vm622_vm10, %v639_v45, 0.0 }
 0x293   :  { %v641_v47 = vrot.slane %v640_v38, 4 }
 0x295   :  { %v642_v48 = vadd.f32 %v641_v47, %v640_v38 }
 0x297   :  { %v643_v51 = vrot.slane %v642_v48, 2 }
 0x299   :  { %v644_v53 = vadd.f32 %v643_v51, %v642_v48 }
 0x29b   :  { %v645_v54 = vrot.slane %v644_v53, 1 }
 0x29d   :  { %v646_v55 = vadd.f32 %v645_v54, %v644_v53 }
 0x29f   :  { %v647_v56 = vmul.f32 %v646_v55, %v636_v40  ;;  %v743_v40 = vperm.slane %v20_v35, 0 }
 0x2a1   :  { %v648_v57 = vadd.f32 1e-05, %v647_v56 }
 0x2a3   :  { %895 = vrsqrt.f32 %v648_v57  ;;  %vm655_vm13 = vweird.f32 %v648_v57 }
 0x2a4   :  { %897 = vrcp.f32 %v904_v15 }
 0x2a9   :  { %v896_v58 = vpop.eup %895 }
 0x2aa   :  { %v650_v60 = vmul.f32 %v896_v58, %v648_v57  ;;  %vm656_vm12 = vweird.f32 %v896_v58  ;;  %v898_v16 = vpop.eup %897 }
 0x2ab   :  { %vm657_vm14 = vmor %vm655_vm13, %vm656_vm12  ;;  %v716_v17 = vmul.f32 16.0, %v898_v16  ;;  %vm720_vm1 = vweird.f32 %v898_v16 }
 0x2ac   :  { %v651_v62 = vmul.f32 %v896_v58, %v650_v60 }
 0x2ad   :  { %v717_v18 = vsub.f32 1.0, %v716_v17 }
 0x2ae   :  { %v652_v63 = vmul.f32 0.5, %v651_v62 }
 0x2af   :  { %v718_v19 = vmul.f32 %v898_v16, %v717_v18 }
 0x2b0   :  { %v653_v0 = vsub.f32 1.5, %v652_v63 }
 0x2b1   :  { %v719_v20 = vadd.f32 %v898_v16, %v718_v19 }
 0x2b2   :  { %v654_v1 = vmul.f32 %v896_v58, %v653_v0 }
 0x2b3   :  { %v721_v21 = vsel %vm720_vm1, %v898_v16, %v719_v20 }
 0x2b4   :  { %v658_v3 = vsel %vm657_vm14, %v896_v58, %v654_v1 }
 0x2b5   :  { %v659_v4 = vmul.f32 %v658_v3, %v638_v43 }
 0x2b7   :  { %v661_v6 = vmul.f32 %v660_v2, %v659_v4 }
 0x2b9   :  { %v663_v7 = vadd.f32 %v662_v5, %v661_v6 }
 0x2bb   :  { %v664_v8 = vmax.f32 %v663_v7, 0.0 }
 0x2bd   :  { %871 = vmatmul.msk.f32.vlgmr.msra.gmra.mxu2 %vm682_vm15, %v664_v8 }
 0x2f1   :  { %v708_v12 = vpop.permute.xlu1 %707 }
 0x340   :  { %v703_v10 = vpop.f32.mrf.mxu2 }
 0x341   :  { %v704_v11 = vadd.f32 %v703_v10, %v665_v9 }
 0x343   :  { %v710_v13 = vadd.f32 %v708_v12, %v704_v11 }
 0x345   :  { %v712_v14 = vsel %vm711_vm0, %v710_v13, 0.0 }
 0x346   :  { %713 = vadd.xlane.f32.xlu1 %v712_v14 }
 0x3b9   :  { %v714_v22 = vpop.xlane.xlu1 %713 }
 0x3ba   :  { %v722_v23 = vmul.f32 %v721_v21, %v714_v22 }
 0x3bc   :  { %v723_v24 = vsub.f32 %v710_v13, %v722_v23 }
 0x3be   :  { %v724_v25 = vmul.f32 %v723_v24, %v723_v24 }
 0x3c0   :  { %v725_v26 = vsel %vm711_vm0, %v724_v25, 0.0 }
 0x3c1   :  { %726 = vadd.xlane.f32.xlu2 %v725_v26 }
 0x434   :  { %v727_v27 = vpop.xlane.xlu2 %726 }
 0x435   :  { %v728_v28 = vmul.f32 %v727_v27, %v721_v21 }
 0x437   :  { %v729_v29 = vadd.f32 1e-05, %v728_v28 }
 0x439   :  { %899 = vrsqrt.f32 %v729_v29  ;;  %vm736_vm3 = vweird.f32 %v729_v29 }
 0x43f   :  { %v900_v30 = vpop.eup %899 }
 0x440   :  { %v731_v31 = vmul.f32 %v900_v30, %v729_v29  ;;  %vm737_vm2 = vweird.f32 %v900_v30 }
 0x441   :  { %vm738_vm4 = vmor %vm736_vm3, %vm737_vm2 }
 0x442   :  { %v732_v32 = vmul.f32 %v900_v30, %v731_v31 }
 0x444   :  { %v733_v33 = vmul.f32 0.5, %v732_v32 }
 0x446   :  { %v734_v34 = vsub.f32 1.5, %v733_v33 }
 0x448   :  { %v735_v36 = vmul.f32 %v900_v30, %v734_v34 }
 0x44a   :  { %v739_v39 = vsel %vm738_vm4, %v900_v30, %v735_v36 }
 0x44b   :  { %v740_v59 = vmul.f32 %v739_v39, %v723_v24 }
 0x44d   :  { %v742_v41 = vmul.f32 %v741_v37, %v740_v59 }
 0x44f   :  { %v744_v42 = vadd.f32 %v743_v40, %v742_v41 }
 0x451   :  { %v746_v43 = vsel %vm745_vm5, %v744_v42, 0.0 }
 0x452   :  { %v748_v44 = vsel %vm747_vm6, %v746_v43, 0.0 }
 0x453   :  { %749 = vst [vmem:[%s1508_s5] sm:$0xff] %v748_v44 }

</bundles_post_ra>
